<compile_context>
chip_gen: v7x
topology: tpu7x:2x2x1
jax: 0.10.0
libtpu: 0.0.40
codegen_flags: <defaults>
</compile_context>

<pallas_src>
import jax
import jax.numpy as jnp
from jax.experimental import pallas as pl
from jax.experimental.pallas import tpu as pltpu


def _value_head_kernel(x_ref, w_ref, b_ref, o_ref, acc_ref):
    # x_ref:   (bn, lt)  tile of x2d = reshape(x, (N, C*H*W))           [VMEM]
    # w_ref:   (1,  lt)  matching tile of folded weights w[c]/(H*W)     [VMEM]
    # b_ref:   (1, 1)    conv bias                                      [SMEM]
    # o_ref:   (bn, 1)   output tile: tanh(value)                       [VMEM]
    # acc_ref: (bn, 1)   f32 running weighted row sums                  [VMEM scratch]
    j = pl.program_id(1)

    @pl.when(j == 0)
    def _init():
        acc_ref[...] = jnp.zeros_like(acc_ref)

    x = x_ref[...].astype(jnp.float32)
    w = w_ref[...].astype(jnp.float32)
    # Fused GAP + 1x1 conv: weighted lane reduction, accumulated over lane tiles.
    acc_ref[...] += jnp.sum(x * w, axis=-1, keepdims=True)

    @pl.when(j == pl.num_programs(1) - 1)
    def _finalize():
        o_ref[...] = jnp.tanh(acc_ref[...] + b_ref[0, 0]).astype(o_ref.dtype)


def _pick_lane_tile(total, target=4096, align=128):
    """Largest multiple of `align` that divides `total` and is <= target; else full."""
    m = (min(target, total) // align) * align
    while m >= align:
        if total % m == 0:
            return m
        m -= align
    return total


def _pick_batch_tile(n, target=256, align=8):
    """Largest multiple of `align` that divides `n` and is <= target; else full."""
    m = (min(target, n) // align) * align
    while m >= align:
        if n % m == 0:
            return m
        m -= align
    return n


def value_head_forward(x_nchw, conv_w, conv_b):
    """x_nchw: (N, C, H, W); conv_w: (1, C, 1, 1); conv_b: (1,)  -> (N, 1, 1, 1)."""
    N, C, H, W = x_nchw.shape
    L = C * H * W

    # Free, contiguous flatten: x2d[n, c*H*W + hw] = x[n, c, h, w].
    x2d = x_nchw.reshape(N, L)

    # Fold the GAP's 1/(H*W) into the conv weight and expand it along the
    # flattened (c, hw) axis so the kernel does a single weighted reduction.
    w_vec = conv_w.reshape(C).astype(jnp.float32) / float(H * W)   # (C,)
    w_full = jnp.repeat(w_vec, H * W).reshape(1, L)                 # (1, L), tiny
    b = conv_b.reshape(1, 1).astype(jnp.float32)

    bn = _pick_batch_tile(N)
    lt = _pick_lane_tile(L)
    grid = (N // bn, L // lt)

    itemsize = jnp.dtype(x2d.dtype).itemsize
    cost = pl.CostEstimate(
        flops=2 * N * L,                 # multiply + add per element
        transcendentals=N,               # one tanh per batch element
        bytes_accessed=N * L * itemsize + L * 4 + N * 4 + 4,
    )

    out = pl.pallas_call(
        _value_head_kernel,
        out_shape=jax.ShapeDtypeStruct((N, 1), jnp.float32),
        grid_spec=pltpu.PrefetchScalarGridSpec(
            num_scalar_prefetch=0,
            grid=grid,
            in_specs=[
                pl.BlockSpec((bn, lt), lambda i, j: (i, j)),   # streaming x tile
                pl.BlockSpec((1, lt), lambda i, j: (0, j)),    # folded weight tile
                pl.BlockSpec(memory_space=pltpu.MemorySpace.SMEM),  # bias scalar
            ],
            out_specs=pl.BlockSpec((bn, 1), lambda i, j: (i, 0)),
            scratch_shapes=[pltpu.VMEM((bn, 1), jnp.float32)],
        ),
        compiler_params=pltpu.CompilerParams(
            dimension_semantics=("parallel", "arbitrary"),
            vmem_limit_bytes=32 * 1024 * 1024,
        ),
        cost_estimate=cost,
    )(x2d, w_full, b)

    return out.reshape(N, 1, 1, 1)


def value_head_ref(x_nchw, conv_w, conv_b):
    # Pure-JAX reference matching the PyTorch module.
    gap = jnp.mean(x_nchw, axis=(2, 3), keepdims=True)                     # (N, C, 1, 1)
    conv = jnp.einsum('nchw,ochw->nohw', gap, conv_w) + conv_b.reshape(1, -1, 1, 1)
    return jnp.tanh(conv)


if __name__ == "__main__":
    key = jax.random.PRNGKey(0)
    k_x, k_w, k_b, k_x2 = jax.random.split(key, 4)

    # Primary small case (matches the module spec shapes).
    N, C, H, W = 2, 4, 16, 16
    x = jax.random.normal(k_x, (N, C, H, W), dtype=jnp.float32)
    fan_in = C
    bound = 1.0 / (fan_in ** 0.5)
    conv_w = jax.random.uniform(k_w, (1, C, 1, 1), minval=-bound, maxval=bound,
                                dtype=jnp.float32)
    conv_b = jax.random.uniform(k_b, (1,), minval=-bound, maxval=bound,
                                dtype=jnp.float32)

    out = jax.block_until_ready(value_head_forward(x, conv_w, conv_b))
    ref = value_head_ref(x, conv_w, conv_b)
    assert out.shape == (N, 1, 1, 1), out.shape
    assert jnp.allclose(out, ref, atol=1e-5, rtol=1e-5), (out, ref)

    # Secondary case: exercises a multi-step reduction grid (C*H*W = 8192 -> 2 lane
    # tiles) and a full 8-row sublane batch tile.
    N2, C2, H2, W2 = 8, 8, 32, 32
    x2 = jax.random.normal(k_x2, (N2, C2, H2, W2), dtype=jnp.float32)
    bound2 = 1.0 / (C2 ** 0.5)
    conv_w2 = jax.random.uniform(k_w, (1, C2, 1, 1), minval=-bound2, maxval=bound2,
                                 dtype=jnp.float32)
    conv_b2 = jax.random.uniform(k_b, (1,), minval=-bound2, maxval=bound2,
                                 dtype=jnp.float32)
    out2 = jax.block_until_ready(value_head_forward(x2, conv_w2, conv_b2))
    ref2 = value_head_ref(x2, conv_w2, conv_b2)
    assert out2.shape == (N2, 1, 1, 1), out2.shape
    assert jnp.allclose(out2, ref2, atol=1e-5, rtol=1e-5), (out2, ref2)

    print("KERNEL_OK")
</pallas_src>

<mosaic_0001>
module attributes {stable_mosaic.version = 11 : i64} {
  func.func @_value_head_kernel(%arg0: i32, %arg1: i32, %arg2: memref<2x1024xf32, #tpu.memory_space<vmem>>, %arg3: memref<1x1024xf32, #tpu.memory_space<vmem>>, %arg4: memref<1x1xf32, #tpu.memory_space<smem>>, %arg5: memref<2x1xf32, #tpu.memory_space<vmem>>, %arg6: memref<2x1xf32, #tpu.memory_space<vmem>>) attributes {dimension_semantics = [#tpu.dimension_semantics<parallel>, #tpu.dimension_semantics<arbitrary>], iteration_bounds = array<i64: 1, 1>, scalar_prefetch = 0 : i64, scratch_operands = 1 : i64, tpu.core_type = #tpu.core_type<tc>, window_params = [{transform_indices = @transform_0, window_bounds = array<i64: 2, 1024>}, {transform_indices = @transform_1, window_bounds = array<i64: 1, 1024>}, {transform_indices = @transform_2, window_bounds = array<i64: 1, 1>}, {transform_indices = @transform_3, window_bounds = array<i64: 2, 1>}]} {
    %c0_i32 = arith.constant 0 : i32
    %0 = arith.cmpi eq, %arg1, %c0_i32 : i32
    %1 = arith.extui %0 : i1 to i32
    %c0_i32_0 = arith.constant 0 : i32
    %2 = arith.cmpi ne, %1, %c0_i32_0 : i32
    scf.if %2 {
      %cst_10 = arith.constant 0.000000e+00 : f32
      %15 = vector.broadcast %cst_10 : f32 to vector<2x1xf32>
      %c0_11 = arith.constant 0 : index
      %c0_12 = arith.constant 0 : index
      %16 = vector.load %arg6[%c0_11, %c0_12] : memref<2x1xf32, #tpu.memory_space<vmem>>, vector<2x1xf32>
      tpu.vector_store %arg6[%c0_11, %c0_12], %15 {strides = array<i32>} : memref<2x1xf32, #tpu.memory_space<vmem>>, vector<2x1xf32>,
    } else {
    }
    %c0 = arith.constant 0 : index
    %c0_1 = arith.constant 0 : index
    %3 = vector.load %arg2[%c0, %c0_1] : memref<2x1024xf32, #tpu.memory_space<vmem>>, vector<2x1024xf32>
    %c0_2 = arith.constant 0 : index
    %c0_3 = arith.constant 0 : index
    %4 = vector.load %arg3[%c0_2, %c0_3] : memref<1x1024xf32, #tpu.memory_space<vmem>>, vector<1x1024xf32>
    %c0_4 = arith.constant 0 : index
    %c0_5 = arith.constant 0 : index
    %5 = vector.load %arg6[%c0_4, %c0_5] : memref<2x1xf32, #tpu.memory_space<vmem>>, vector<2x1xf32>
    %6 = vector.broadcast %4 : vector<1x1024xf32> to vector<2x1024xf32>
    %7 = arith.mulf %3, %6 : vector<2x1024xf32>
    %cst = arith.constant dense<0.000000e+00> : vector<2xf32>
    %8 = vector.multi_reduction <add>, %7, %cst [1] : vector<2x1024xf32> to vector<2xf32>
    %9 = vector.shape_cast %8 : vector<2xf32> to vector<2x1xf32>
    %10 = arith.addf %5, %9 : vector<2x1xf32>
    %c0_6 = arith.constant 0 : index
    %c0_7 = arith.constant 0 : index
    %11 = vector.load %arg6[%c0_6, %c0_7] : memref<2x1xf32, #tpu.memory_space<vmem>>, vector<2x1xf32>
    tpu.vector_store %arg6[%c0_6, %c0_7], %10 {strides = array<i32>} : memref<2x1xf32, #tpu.memory_space<vmem>>, vector<2x1xf32>,
    %c0_i32_8 = arith.constant 0 : i32
    %12 = arith.cmpi eq, %arg1, %c0_i32_8 : i32
    %13 = arith.extui %12 : i1 to i32
    %c0_i32_9 = arith.constant 0 : i32
    %14 = arith.cmpi ne, %13, %c0_i32_9 : i32
    scf.if %14 {
      %c0_10 = arith.constant 0 : index
      %c0_11 = arith.constant 0 : index
      %15 = vector.load %arg6[%c0_10, %c0_11] : memref<2x1xf32, #tpu.memory_space<vmem>>, vector<2x1xf32>
      %c0_12 = arith.constant 0 : index
      %c0_13 = arith.constant 0 : index
      %16 = memref.load %arg4[%c0_12, %c0_13] : memref<1x1xf32, #tpu.memory_space<smem>>
      %17 = vector.broadcast %16 : f32 to vector<2x1xf32>
      %18 = arith.addf %15, %17 : vector<2x1xf32>
      %19 = math.tanh %18 : vector<2x1xf32>
      %c0_14 = arith.constant 0 : index
      %c0_15 = arith.constant 0 : index
      %20 = vector.load %arg5[%c0_14, %c0_15] : memref<2x1xf32, #tpu.memory_space<vmem>>, vector<2x1xf32>
      tpu.vector_store %arg5[%c0_14, %c0_15], %19 {strides = array<i32>} : memref<2x1xf32, #tpu.memory_space<vmem>>, vector<2x1xf32>,
    } else {
    }
    return
  }
  func.func @transform_0(%arg0: i32, %arg1: i32) -> (i32, i32) {
    %c0_i32 = arith.constant 0 : i32
    return %arg0, %arg1 : i32, i32
  }
  func.func @transform_1(%arg0: i32, %arg1: i32) -> (i32, i32) {
    %c0_i32 = arith.constant 0 : i32
    %c0_i32_0 = arith.constant 0 : i32
    return %c0_i32, %arg1 : i32, i32
  }
  func.func @transform_2(%arg0: i32, %arg1: i32) -> (i32, i32) {
    %c0_i32 = arith.constant 0 : i32
    %c0_i32_0 = arith.constant 0 : i32
    %c0_i32_1 = arith.constant 0 : i32
    return %c0_i32, %c0_i32_0 : i32, i32
  }
  func.func @transform_3(%arg0: i32, %arg1: i32) -> (i32, i32) {
    %c0_i32 = arith.constant 0 : i32
    %c0_i32_0 = arith.constant 0 : i32
    return %arg0, %c0_i32 : i32, i32
  }
}

</mosaic_0001>

<bundles_post_ra>
// kernel: tpu_custom_call.1
= control target key start
LH: loop header
LB: loop body
LE: loop exit
PB: predicated region body
PF: predicated region fallthrough
CT: control target
= control target key end

     0   :  { %9 = vsyncpa [#allocation5], 0  ;;  %s319_s0 = inlined_call_operand.hbm [shape: f32[2,1024], index: 0, kind: input, shape index: {}]   ;;  %s320_s1 = inlined_call_operand.hbm [shape: f32[1,1024], index: 1, kind: input, shape index: {}]   ;;  %s321_s2 = inlined_call_operand.<no memory space> [shape: f32[1,1], index: 2, kind: input, shape index: {}]   ;;  %s322_s3 = inlined_call_operand.vmem [shape: f32[2,1], index: 3, kind: output, shape index: {}]  }
   0x1   :  { %10 = vsyncpa [#allocation7], 0  ;;  %s254_s12 = smov [#allocation4]   ;;  %s255_s14 = smov [#allocation6]  }
   0x2   :  { %s17_s13 = sshll.u32 %s254_s12, 4  ;;  %s27_s15 = sshll.u32 %s255_s14, 4  ;;  %s18_s13 = int_to_ptr.vmem [resolvable:$true] %s17_s13  ;;  %s28_s15 = int_to_ptr.vmem [resolvable:$true] %s27_s15 }
   0x3   :  { %s206_s18 = scalar_lea.hbm %s319_s0, 256 }
   0x4   :  { %p207_p0 = scmp.ne.s32.totalorder %s319_s0, %s206_s18  ;;  %p210_p1 = scmp.lt.u32.totalorder %s206_s18, %s319_s0 }
   0x6   :  { %p212_p2 = pnand %p210_p1, %p207_p0 }
   0x8   :  { %215 = shalt.err (!%p212_p2)
}
   0x9   :  { %s216_s23 = scalar_lea.vmem %s18_s13, 256  ;;  %p221_p4 = scmp.lt.s32.totalorder %s18_s13, %s18_s13 }
   0xa   :  { %p217_p3 = scmp.ne.s32.totalorder %s18_s13, %s216_s23  ;;  %p222_p5 = scmp.lt.s32.totalorder %s216_s23, %s216_s23 }
   0xc   :  { %p223_p6 = por %p222_p5, %p221_p4 }
   0xe   :  { %p224_p7 = pnand %p223_p6, %p217_p3 }
  0x10   :  { %227 = shalt.err (!%p224_p7)
}
  0x11   :  { %20 = dma.hbm_to_vmem [thread:$0]  %s319_s0, 256, %s18_s13, [#allocation5]  }
  0x12   :  { %s228_s28 = scalar_lea.hbm %s320_s1, 128 }
  0x13   :  { %p229_p8 = scmp.ne.s32.totalorder %s320_s1, %s228_s28  ;;  %p232_p9 = scmp.lt.u32.totalorder %s228_s28, %s320_s1 }
  0x15   :  { %p234_p10 = pnand %p232_p9, %p229_p8 }
  0x17   :  { %237 = shalt.err (!%p234_p10)
}
  0x18   :  { %s238_s6 = scalar_lea.vmem %s28_s15, 128  ;;  %p243_p12 = scmp.lt.s32.totalorder %s28_s15, %s28_s15 }
  0x19   :  { %p239_p11 = scmp.ne.s32.totalorder %s28_s15, %s238_s6  ;;  %p244_p13 = scmp.lt.s32.totalorder %s238_s6, %s238_s6 }
  0x1b   :  { %p245_p0 = por %p244_p13, %p243_p12 }
  0x1d   :  { %p246_p1 = pnand %p245_p0, %p239_p11 }
  0x1f   :  { %249 = shalt.err (!%p246_p1)
}
  0x20   :  { %30 = dma.hbm_to_vmem [thread:$0]  %s320_s1, 128, %s28_s15, [#allocation7]  }
  0x21   :  { %250 = dma.done.wait [#allocation5], 256  }
  0x22   :  { %251 = vsyncadd [#allocation5], 4294967040 }
  0x23   :  { %252 = dma.done.wait [#allocation7], 128  }
  0x24   :  { %253 = vsyncadd [#allocation7], 4294967168  ;;  %v50_v0 = vlaneseq  ;;  %vm43_vm0 = vcmask 1024   ;;  %v256_v1 = vmov 1983009808   ;;  %v257_v4 = vmov 0.0  }
  0x25   :  { %v85_v2 = vunpack.c.l.s4 %v256_v1  ;;  %44 = vst.msk [vmem:[#allocation2] sm:$0x3] %vm43_vm0, %v257_v4  ;;  %v47_v14 = vld [vmem:[#allocation6] sm:$0xff]  ;;  %v45_v30 = vld [vmem:[#allocation4] sm:$0xff]  ;;  %v46_v33 = vld [vmem:[#allocation4 + $0x8] sm:$0xff]  ;;  %vm164_vm1 = vcmask 1041408  }
  0x26   :  { %v51_v3 = vshrl.u32 %v50_v0, 7 }
  0x27   :  { %v86_v5 = vunpack.c.0.s8 %v85_v2  ;;  %v190_v2 = vstv %s321_s2 }
  0x28   :  { %v52_v6 = vsub.s32 0, %v51_v3  ;;  %v56_v7 = vsub.s32 1, %v51_v3  ;;  %v60_v8 = vsub.s32 2, %v51_v3  ;;  %v64_v9 = vsub.s32 3, %v51_v3 }
  0x29   :  { %v68_v10 = vsub.s32 4, %v51_v3  ;;  %v72_v11 = vsub.s32 5, %v51_v3  ;;  %v76_v12 = vsub.s32 6, %v51_v3  ;;  %v80_v13 = vsub.s32 7, %v51_v3 }
  0x2a   :  { %v89_v15 = vsub.s32 %v86_v5, %v51_v3  ;;  %v53_v16 = vrot.slane %v47_v14, %v52_v6  ;;  %v57_v17 = vrot.slane %v47_v14, %v56_v7  ;;  %v61_v18 = vrot.slane %v47_v14, %v60_v8 }
  0x2b   :  { %v65_v19 = vrot.slane %v47_v14, %v64_v9  ;;  %v69_v20 = vrot.slane %v47_v14, %v68_v10  ;;  %v73_v21 = vrot.slane %v47_v14, %v72_v11  ;;  %v77_v22 = vrot.slane %v47_v14, %v76_v12 }
  0x2c   :  { %v81_v23 = vrot.slane %v47_v14, %v80_v13  ;;  %v82_v24 = vcombine.low %v53_v16, %v57_v17  ;;  %v48_v63 = vld [vmem:[#allocation2] sm:$0x3] }
  0x2d   :  { %v83_v25 = vcombine.low %v61_v18, %v65_v19  ;;  %v99_v26 = vcombine.low %v69_v20, %v73_v21 }
  0x2e   :  { %v100_v27 = vcombine.low %v77_v22, %v81_v23  ;;  %v90_v28 = vrot.slane %v82_v24, %v89_v15 }
  0x2f   :  { %v97_v29 = vrot.slane %v83_v25, %v89_v15  ;;  %v107_v31 = vrot.slane %v99_v26, %v89_v15 }
  0x30   :  { %v114_v32 = vrot.slane %v100_v27, %v89_v15 }
  0x31   :  { %v98_v34 = vcombine.low %v90_v28, %v97_v29 }
  0x32   :  { %v115_v35 = vcombine.low %v107_v31, %v114_v32 }
  0x33   :  { %v118_v36 = vmul.f32 %v98_v34, %v45_v30 }
  0x34   :  { %v119_v37 = vmul.f32 %v115_v35, %v46_v33 }
  0x35   :  { %v122_v38 = vcombine.high %v118_v36, %v118_v36  ;;  %v129_v39 = vrot.slane %v118_v36, %v89_v15 }
  0x36   :  { %v139_v40 = vcombine.high %v119_v37, %v119_v37  ;;  %v146_v43 = vrot.slane %v119_v37, %v89_v15 }
  0x37   :  { %v136_v41 = vrot.slane %v122_v38, %v89_v15  ;;  %v137_v42 = vcombine.high %v129_v39, %v129_v39  ;;  %v165_v44 = vsel %vm164_vm1, %v129_v39, 0.0 }
  0x38   :  { %v153_v49 = vrot.slane %v139_v40, %v89_v15  ;;  %v154_v50 = vcombine.high %v146_v43, %v146_v43  ;;  %v172_v53 = vsel %vm164_vm1, %v146_v43, 0.0 }
  0x39   :  { %v138_v45 = vcombine.high %v136_v41, %v136_v41  ;;  %v166_v46 = vsel %vm164_vm1, %v137_v42, 0.0  ;;  %v168_v47 = vsel %vm164_vm1, %v136_v41, 0.0 }
  0x3a   :  { %v167_v48 = vadd.f32 %v166_v46, %v165_v44  ;;  %v155_v55 = vcombine.high %v153_v49, %v153_v49  ;;  %v174_v56 = vsel %vm164_vm1, %v154_v50, 0.0  ;;  %v176_v58 = vsel %vm164_vm1, %v153_v49, 0.0 }
  0x3b   :  { %v170_v51 = vsel %vm164_vm1, %v138_v45, 0.0 }
  0x3c   :  { %v169_v52 = vadd.f32 %v168_v47, %v167_v48  ;;  %v178_v60 = vsel %vm164_vm1, %v155_v55, 0.0 }
  0x3e   :  { %v171_v54 = vadd.f32 %v170_v51, %v169_v52 }
  0x40   :  { %v173_v57 = vadd.f32 %v172_v53, %v171_v54 }
  0x42   :  { %v175_v59 = vadd.f32 %v174_v56, %v173_v57 }
  0x44   :  { %v177_v61 = vadd.f32 %v176_v58, %v175_v59 }
  0x46   :  { %v179_v62 = vadd.f32 %v178_v60, %v177_v61 }
  0x48   :  { %180 = vadd.xlane.f32.xlu0 %v179_v62 }
  0xd5   :  { %v181_v0 = vpop.xlane.xlu0 %180 }
  0xd6   :  { %v182_v1 = vadd.f32 %v181_v0, %v48_v63 }
  0xd8   :  { %184 = vst.msk [vmem:[#allocation2] sm:$0x3] %vm43_vm0, %v182_v1 }
  0xdf   :  { %v188_v3 = vld [vmem:[#allocation2] sm:$0x3] }
  0xe0   :  { %v191_v4 = vadd.f32 %v190_v2, %v188_v3 }
  0xe2   :  { %204 = vtanh.f32 %v191_v4 }
  0xec   :  { %v205_v5 = vpop.eup %204 }
  0xed   :  { %193 = vst.msk [vmem:[%s322_s3] sm:$0x3] %vm43_vm0, %v205_v5 }
  0xee   :  { %198 = vsyncpa [#allocation5], 1 }
  0xef   :  { %199 = vsyncpa [#allocation7], 1 }

</bundles_post_ra>
